<compile_context>
chip_gen: v7x
topology: tpu7x:2x2x1
jax: 0.10.0
libtpu: 0.0.40
codegen_flags: <defaults>
</compile_context>

<pallas_src>
import math
import jax
import jax.numpy as jnp
from jax.experimental import pallas as pl
from jax.experimental.pallas import tpu as pltpu


def _round_up(x, m):
    return ((x + m - 1) // m) * m


# ---------------------------------------------------------------------------
# Kernel 1: event transform  y = x @ W + b,  (M, K) @ (K, N) -> (M, N)
# ---------------------------------------------------------------------------
def _linear_kernel(x_ref, w_ref, b_ref, o_ref):
    # Feed the MXU in the input dtype; f32 accumulation via preferred_element_type.
    y = jnp.dot(x_ref[...], w_ref[...], preferred_element_type=jnp.float32)
    y = y + b_ref[...].astype(jnp.float32)
    o_ref[...] = y.astype(o_ref.dtype)


def event_transform(x, weight, bias):
    """x: (M, K), weight: (K, N) (transpose of torch Linear.weight), bias: (N,)."""
    M, K = x.shape
    Kw, N = weight.shape
    assert Kw == K

    # N (lane) tiling: pad to a multiple of 128 so stores are full-lane vst's.
    Np = _round_up(N, 128)
    TN = Np if Np <= 512 else 512
    Np = _round_up(Np, TN)
    # M (sublane) tiling: 256-row tiles for large M, otherwise one tile padded
    # up to a multiple of 8.
    TM = 256 if M >= 256 else _round_up(max(M, 1), 8)
    Mp = _round_up(M, TM)
    # K = 2*dim+1 is small: keep it untiled (block == full extent), so no
    # accumulator scratch / "arbitrary" reduction axis is needed.

    x_p = x if Mp == M else jnp.pad(x, ((0, Mp - M), (0, 0)))
    w_p = weight if Np == N else jnp.pad(weight, ((0, 0), (0, Np - N)))
    b_p = bias.reshape(1, N)
    if Np != N:
        b_p = jnp.pad(b_p, ((0, 0), (0, Np - N)))

    grid = (Mp // TM, Np // TN)
    itemsize = jnp.dtype(x.dtype).itemsize
    cost = pl.CostEstimate(
        flops=2 * Mp * K * Np,
        transcendentals=0,
        bytes_accessed=(Mp * K + K * Np + Np + Mp * Np) * itemsize,
    )

    out = pl.pallas_call(
        _linear_kernel,
        out_shape=jax.ShapeDtypeStruct((Mp, Np), x.dtype),
        grid_spec=pltpu.PrefetchScalarGridSpec(
            num_scalar_prefetch=0,
            grid=grid,
            in_specs=[
                # x marches down M; W / bias stay resident across the M axis.
                pl.BlockSpec((TM, K), lambda i, j: (i, 0)),
                pl.BlockSpec((K, TN), lambda i, j: (0, j)),
                pl.BlockSpec((1, TN), lambda i, j: (0, j)),
            ],
            out_specs=pl.BlockSpec((TM, TN), lambda i, j: (i, j)),
        ),
        compiler_params=pltpu.CompilerParams(
            dimension_semantics=("parallel", "parallel"),
            vmem_limit_bytes=32 * 1024 * 1024,
        ),
        cost_estimate=cost,
    )(x_p, w_p, b_p)

    return out[:M, :N]


# ---------------------------------------------------------------------------
# Kernel 2: permutation-invariant finalize (user + item fused in one call):
#   out[b, n, :] = state[b, n, :] + max_n' global[b, n', :]
# ---------------------------------------------------------------------------
def _pool_add_kernel(state_ref, glob_ref, o_ref):
    pooled = jnp.max(glob_ref[...].astype(jnp.float32), axis=1, keepdims=True)
    o_ref[...] = (state_ref[...].astype(jnp.float32) + pooled).astype(o_ref.dtype)


def pool_and_add(user_state, user_global, item_state, item_global,
                 num_nodes, bs, dim):
    def perm(a):  # (num_nodes*bs, dim) -> (bs, num_nodes, dim)
        return a.reshape(num_nodes, bs, dim).transpose(1, 0, 2)

    # Stack user / item along the batch axis -> one Pallas launch for both.
    st = jnp.concatenate([perm(user_state), perm(item_state)], axis=0)
    gl = jnp.concatenate([perm(user_global), perm(item_global)], axis=0)

    out = pl.pallas_call(
        _pool_add_kernel,
        out_shape=jax.ShapeDtypeStruct((2 * bs, num_nodes, dim), user_state.dtype),
        grid_spec=pltpu.PrefetchScalarGridSpec(
            num_scalar_prefetch=0,
            grid=(2 * bs,),
            in_specs=[
                pl.BlockSpec((1, num_nodes, dim), lambda b: (b, 0, 0)),
                pl.BlockSpec((1, num_nodes, dim), lambda b: (b, 0, 0)),
            ],
            out_specs=pl.BlockSpec((1, num_nodes, dim), lambda b: (b, 0, 0)),
        ),
        compiler_params=pltpu.CompilerParams(
            dimension_semantics=("parallel",)),
    )(st, gl)
    return out[:bs], out[bs:]


# ---------------------------------------------------------------------------
# Full forward (test=False path)
# ---------------------------------------------------------------------------
def perm_invar_event_encoder_forward(params, streams, bs):
    user_emb = params["user_embeddings"]        # (num_nodes, dim)
    item_emb = params["item_embeddings"]        # (num_nodes, dim)
    w = params["transform_w"]                   # (2*dim+1, 4*dim)
    b = params["transform_b"]                   # (4*dim,)
    num_nodes, dim = user_emb.shape
    S = num_nodes * bs

    users_l, items_l, msgs_l = streams
    # Batch every stream step into one matmul + one scatter-add.  Addition
    # commutes, so this equals the sequential per-step accumulation.
    users = jnp.concatenate([jnp.asarray(u, jnp.int32) for u in users_l])
    items = jnp.concatenate([jnp.asarray(i, jnp.int32) for i in items_l])
    msgs = jnp.concatenate(
        [jnp.asarray(m, jnp.float32).reshape(-1) for m in msgs_l]).reshape(-1, 1)

    # TODO(synk): embedding gather and scatter-add are data-dependent index ops
    # with no clean static BlockSpec expression; they stay in XLA and are
    # negligible next to the matmul.
    ue = jnp.take(user_emb, users % num_nodes, axis=0)
    ie = jnp.take(item_emb, items % num_nodes, axis=0)
    event_inputs = jnp.concatenate([ue, ie, msgs], axis=-1)   # (E_total, 2*dim+1)

    enc = event_transform(event_inputs, w, b)                 # Pallas matmul
    uu, iu, ug, ig = jnp.split(enc, 4, axis=-1)

    # TODO(synk): PyTorch's `state[idx] += v` drops duplicate indices within a
    # step; `.at[].add` accumulates them.  Streams here use unique per-step
    # indices, where both agree.
    user_state = jnp.zeros((S, dim), jnp.float32).at[users].add(uu)
    item_state = jnp.zeros((S, dim), jnp.float32).at[items].add(iu)
    user_global = jnp.zeros((S, dim), jnp.float32).at[users].add(ug)
    item_global = jnp.zeros((S, dim), jnp.float32).at[items].add(ig)

    # TODO(synk): the `test=True` branch of the PyTorch module references an
    # undefined global `all_num`; only the test=False return path is implemented.
    ret_u, ret_i = pool_and_add(user_state, user_global, item_state, item_global,
                                num_nodes, bs, dim)
    return ret_u, ret_i


# ---------------------------------------------------------------------------
# Pure-JAX reference (sequential per-step, same math, no Pallas) and init
# ---------------------------------------------------------------------------
def _reference_forward(params, streams, bs):
    user_emb = params["user_embeddings"]
    item_emb = params["item_embeddings"]
    w, b = params["transform_w"], params["transform_b"]
    num_nodes, dim = user_emb.shape
    S = num_nodes * bs
    user_state = jnp.zeros((S, dim), jnp.float32)
    item_state = jnp.zeros((S, dim), jnp.float32)
    user_global = jnp.zeros((S, dim), jnp.float32)
    item_global = jnp.zeros((S, dim), jnp.float32)
    for users, items, messages in zip(*streams):
        users = jnp.asarray(users, jnp.int32)
        items = jnp.asarray(items, jnp.int32)
        msgs = jnp.asarray(messages, jnp.float32).reshape(-1, 1)
        ue = user_emb[users % num_nodes]
        ie = item_emb[items % num_nodes]
        enc = jnp.concatenate([ue, ie, msgs], -1) @ w + b
        uu, iu, ug, ig = jnp.split(enc, 4, axis=-1)
        user_state = user_state.at[users].add(uu)
        item_state = item_state.at[items].add(iu)
        user_global = user_global.at[users].add(ug)
        item_global = item_global.at[items].add(ig)

    def pool(state, glob):
        st = state.reshape(num_nodes, bs, dim).transpose(1, 0, 2)
        gl = glob.reshape(num_nodes, bs, dim).transpose(1, 0, 2)
        return st + jnp.max(gl, axis=1, keepdims=True)

    return pool(user_state, user_global), pool(item_state, item_global)


def init_params(key, num_nodes, dim, dtype=jnp.float32):
    k_ue, k_ie, k_w, k_b = jax.random.split(key, 4)
    in_f, out_f = 2 * dim + 1, 4 * dim
    # torch.nn.Embedding default init ~ N(0, 1); Linear kaiming-uniform.
    user_emb = jax.random.normal(k_ue, (num_nodes, dim), dtype)
    item_emb = jax.random.normal(k_ie, (num_nodes, dim), dtype)
    limit = 1.0 / math.sqrt(in_f)
    # PyTorch stores Linear.weight as (out, in); we store its transpose (in, out).
    w = jax.random.uniform(k_w, (in_f, out_f), dtype, minval=-limit, maxval=limit)
    b = jax.random.uniform(k_b, (out_f,), dtype, minval=-limit, maxval=limit)
    return {"user_embeddings": user_emb, "item_embeddings": item_emb,
            "transform_w": w, "transform_b": b}


if __name__ == "__main__":
    key = jax.random.PRNGKey(0)
    num_nodes, bs, dim = 16, 2, 32
    n_steps, events_per_step = 3, 24

    k_params, k_stream = jax.random.split(key)
    params = init_params(k_params, num_nodes, dim)

    # Deterministic streams: unique indices per step so the scatter semantics
    # (`state[idx] += v`) are unambiguous and match the PyTorch module.
    S = num_nodes * bs
    users_l, items_l, msgs_l = [], [], []
    for _ in range(n_steps):
        k_stream, ku, ki, km = jax.random.split(k_stream, 4)
        users_l.append(jax.random.permutation(ku, S)[:events_per_step].astype(jnp.int32))
        items_l.append(jax.random.permutation(ki, S)[:events_per_step].astype(jnp.int32))
        msgs_l.append(jax.random.normal(km, (events_per_step,), jnp.float32))
    streams = (users_l, items_l, msgs_l)

    ret_u, ret_i = perm_invar_event_encoder_forward(params, streams, bs)
    ret_u, ret_i = jax.block_until_ready((ret_u, ret_i))

    ref_u, ref_i = _reference_forward(params, streams, bs)
    assert ret_u.shape == (bs, num_nodes, dim)
    assert ret_i.shape == (bs, num_nodes, dim)
    assert jnp.allclose(ret_u, ref_u, atol=1e-4, rtol=1e-4)
    assert jnp.allclose(ret_i, ref_i, atol=1e-4, rtol=1e-4)

    print("KERNEL_OK")
</pallas_src>

<mosaic_0001>
module attributes {stable_mosaic.version = 11 : i64} {
  func.func @_linear_kernel(%arg0: i32, %arg1: i32, %arg2: memref<72x65xf32, #tpu.memory_space<vmem>>, %arg3: memref<65x128xf32, #tpu.memory_space<vmem>>, %arg4: memref<1x128xf32, #tpu.memory_space<vmem>>, %arg5: memref<72x128xf32, #tpu.memory_space<vmem>>) attributes {dimension_semantics = [#tpu.dimension_semantics<parallel>, #tpu.dimension_semantics<parallel>], iteration_bounds = array<i64: 1, 1>, scalar_prefetch = 0 : i64, scratch_operands = 0 : i64, tpu.core_type = #tpu.core_type<tc>, window_params = [{transform_indices = @transform_0, window_bounds = array<i64: 72, 65>}, {transform_indices = @transform_1, window_bounds = array<i64: 65, 128>}, {transform_indices = @transform_2, window_bounds = array<i64: 1, 128>}, {transform_indices = @transform_3, window_bounds = array<i64: 72, 128>}]} {
    %c0 = arith.constant 0 : index
    %c0_0 = arith.constant 0 : index
    %0 = vector.load %arg2[%c0, %c0_0] : memref<72x65xf32, #tpu.memory_space<vmem>>, vector<72x65xf32>
    %c0_1 = arith.constant 0 : index
    %c0_2 = arith.constant 0 : index
    %1 = vector.load %arg3[%c0_1, %c0_2] : memref<65x128xf32, #tpu.memory_space<vmem>>, vector<65x128xf32>
    %cst = arith.constant dense<0.000000e+00> : vector<72x128xf32>
    %2 = tpu.matmul %0, %1, %cst {dimension_numbers = #tpu.dot_dimension_numbers<[1], [0], [0], [1], [0, 0, 1, 1], [], []>} : vector<72x65xf32>, vector<65x128xf32>, vector<72x128xf32> -> vector<72x128xf32>
    %c0_3 = arith.constant 0 : index
    %c0_4 = arith.constant 0 : index
    %3 = vector.load %arg4[%c0_3, %c0_4] : memref<1x128xf32, #tpu.memory_space<vmem>>, vector<1x128xf32>
    %4 = vector.broadcast %3 : vector<1x128xf32> to vector<72x128xf32>
    %5 = arith.addf %2, %4 : vector<72x128xf32>
    %c0_5 = arith.constant 0 : index
    %c0_6 = arith.constant 0 : index
    %6 = vector.load %arg5[%c0_5, %c0_6] : memref<72x128xf32, #tpu.memory_space<vmem>>, vector<72x128xf32>
    tpu.vector_store %arg5[%c0_5, %c0_6], %5 {strides = array<i32>} : memref<72x128xf32, #tpu.memory_space<vmem>>, vector<72x128xf32>,
    return
  }
  func.func @transform_0(%arg0: i32, %arg1: i32) -> (i32, i32) {
    %c0_i32 = arith.constant 0 : i32
    %c0_i32_0 = arith.constant 0 : i32
    return %arg0, %c0_i32 : i32, i32
  }
  func.func @transform_1(%arg0: i32, %arg1: i32) -> (i32, i32) {
    %c0_i32 = arith.constant 0 : i32
    %c0_i32_0 = arith.constant 0 : i32
    return %c0_i32, %arg1 : i32, i32
  }
  func.func @transform_2(%arg0: i32, %arg1: i32) -> (i32, i32) {
    %c0_i32 = arith.constant 0 : i32
    %c0_i32_0 = arith.constant 0 : i32
    return %c0_i32, %arg1 : i32, i32
  }
  func.func @transform_3(%arg0: i32, %arg1: i32) -> (i32, i32) {
    %c0_i32 = arith.constant 0 : i32
    return %arg0, %arg1 : i32, i32
  }
}

</mosaic_0001>

<bundles_post_ra>
// kernel: tpu_custom_call.1
= control target key start
LH: loop header
LB: loop body
LE: loop exit
PB: predicated region body
PF: predicated region fallthrough
CT: control target
= control target key end

     0   :  { %8 = vsyncpa [#allocation3], 0  ;;  %s507_s0 = inlined_call_operand.hbm [shape: f32[72,65], index: 0, kind: input, shape index: {}]   ;;  %s508_s1 = inlined_call_operand.hbm [shape: f32[65,128], index: 1, kind: input, shape index: {}]   ;;  %s509_s2 = inlined_call_operand.vmem [shape: f32[1,128], index: 2, kind: input, shape index: {}]   ;;  %s510_s3 = inlined_call_operand.hbm [shape: f32[72,128], index: 3, kind: output, shape index: {}]  }
   0x1   :  { %9 = vsyncpa [#allocation6], 0 }
   0x2   :  { %10 = vsyncpa [#allocation4], 0  ;;  %s413_s12 = smov [#allocation2]   ;;  %s341_s16 = scalar_lea.hbm %s507_s0, 1152 }
   0x3   :  { %s16_s13 = sshll.u32 %s413_s12, 4  ;;  %p342_p0 = scmp.ne.s32.totalorder %s507_s0, %s341_s16  ;;  %s17_s13 = int_to_ptr.vmem [resolvable:$true] %s16_s13 }
   0x4   :  { %p345_p1 = scmp.lt.u32.totalorder %s341_s16, %s507_s0 }
   0x6   :  { %p347_p2 = pnand %p345_p1, %p342_p0 }
   0x8   :  { %350 = shalt.err (!%p347_p2)
}
   0x9   :  { %s351_s21 = scalar_lea.vmem %s17_s13, 1152  ;;  %p356_p4 = scmp.lt.s32.totalorder %s17_s13, %s17_s13 }
   0xa   :  { %p352_p3 = scmp.ne.s32.totalorder %s17_s13, %s351_s21  ;;  %p357_p5 = scmp.lt.s32.totalorder %s351_s21, %s351_s21 }
   0xc   :  { %p358_p6 = por %p357_p5, %p356_p4 }
   0xe   :  { %p359_p7 = pnand %p358_p6, %p352_p3 }
  0x10   :  { %362 = shalt.err (!%p359_p7)
}
  0x11   :  { %s414_s22 = smov 128   ;;  %s415_s23 = smov 8  }
  0x12   :  { %22 = dma.hbm_to_vmem [thread:$0]  %s507_s0, 1152, %s17_s13, [#allocation3], %s414_s22, %s414_s22, %s415_s23  }
  0x13   :  { %s416_s26 = smov [#allocation5]   ;;  %s363_s30 = scalar_lea.hbm %s508_s1, 1152 }
  0x14   :  { %s28_s27 = sshll.u32 %s416_s26, 4  ;;  %p364_p8 = scmp.ne.s32.totalorder %s508_s1, %s363_s30  ;;  %s29_s27 = int_to_ptr.vmem [resolvable:$true] %s28_s27 }
  0x15   :  { %p367_p9 = scmp.lt.u32.totalorder %s363_s30, %s508_s1 }
  0x17   :  { %p369_p10 = pnand %p367_p9, %p364_p8 }
  0x19   :  { %372 = shalt.err (!%p369_p10)
}
  0x1a   :  { %s373_s8 = scalar_lea.vmem %s29_s27, 1152  ;;  %p378_p12 = scmp.lt.s32.totalorder %s29_s27, %s29_s27 }
  0x1b   :  { %p374_p11 = scmp.ne.s32.totalorder %s29_s27, %s373_s8  ;;  %p379_p13 = scmp.lt.s32.totalorder %s373_s8, %s373_s8 }
  0x1d   :  { %p380_p0 = por %p379_p13, %p378_p12 }
  0x1f   :  { %p381_p1 = pnand %p380_p0, %p374_p11 }
  0x21   :  { %384 = shalt.err (!%p381_p1)
}
  0x22   :  { %34 = dma.hbm_to_vmem [thread:$0]  %s508_s1, 1152, %s29_s27, [#allocation6], %s414_s22, %s414_s22, %s415_s23  }
  0x23   :  { %407 = dma.done.wait [#allocation3], 1152  }
  0x24   :  { %408 = vsyncadd [#allocation3], 4294966144 }
  0x25   :  { %409 = dma.done.wait [#allocation6], 1152  }
  0x26   :  { %410 = vsyncadd [#allocation6], 4294966144  ;;  %v417_v0 = vmov 0.0|0.0   ;;  %vm418_vm0 = vmmov 0   ;;  %v419_v1 = vmov 0.0   ;;  %v52_v2 = vld [vmem:[#allocation5] sm:$0xff] }
  0x27   :  { %311 = vmatprep.subr.bf16.mxu0 %v417_v0  ;;  %323 = vmatprep.subr.bf16.mxu1 %v417_v0  ;;  %v53_v3 = vld [vmem:[#allocation5 + $0x8] sm:$0xff]  ;;  %v54_v4 = vld [vmem:[#allocation5 + $0x10] sm:$0xff]  ;;  %v55_v6 = vld [vmem:[#allocation5 + $0x18] sm:$0xff]  ;;  %vm96_vm1 = vcmask 1040384   ;;  %vm68_vm2 = vcmask 531456  }
  0x28   :  { %284 = vmatprep.mubr.msk.f32.mxu0 %vm418_vm0, %v419_v1  ;;  %299 = vmatprep.mubr.msk.f32.mxu1 %vm418_vm0, %v419_v1  ;;  %v312_v5 = vpack.c.bf16 %v53_v3, %v52_v2  ;;  %v315_v7 = vpack.c.bf16 %v55_v6, %v54_v4  ;;  %v56_v8 = vld [vmem:[#allocation5 + $0x20] sm:$0xff]  ;;  %v57_v9 = vld [vmem:[#allocation5 + $0x28] sm:$0xff]  ;;  %v58_v11 = vld [vmem:[#allocation5 + $0x30] sm:$0xff] }
  0x29   :  { %v318_v10 = vpack.c.bf16 %v57_v9, %v56_v8  ;;  %v59_v12 = vld [vmem:[#allocation5 + $0x38] sm:$0xff]  ;;  %v60_v14 = vld [vmem:[#allocation5 + $0x40] sm:$0x1]  ;;  %v49_v18 = vld [vmem:[#allocation2 + $0x30] sm:$0xff] }
  0x2a   :  { %313 = vmatpush3.bf16.msra.mxu0 %v312_v5  ;;  %328 = vmatpush3.bf16.msra.mxu1 %v312_v5  ;;  %v321_v13 = vpack.c.bf16 %v59_v12, %v58_v11  ;;  %v43_v15 = vld [vmem:[#allocation2] sm:$0xff]  ;;  %v48_v16 = vld [vmem:[#allocation2 + $0x28] sm:$0xff]  ;;  %v45_v19 = vld [vmem:[#allocation2 + $0x10] sm:$0xff] }
  0x2b   :  { %314 = vmatprep.subr.bf16.mxu0 %v417_v0  ;;  %324 = vmatprep.subr.bf16.mxu1 %v417_v0  ;;  %v44_v17 = vld [vmem:[#allocation2 + $0x8] sm:$0xff]  ;;  %v50_v20 = vld [vmem:[#allocation2 + $0x38] sm:$0xff]  ;;  %v51_v22 = vld [vmem:[#allocation2 + $0x40] sm:$0xff] }
  0x2c   :  { %v46_v21 = vld [vmem:[#allocation2 + $0x18] sm:$0xff]  ;;  %v47_v23 = vld [vmem:[#allocation2 + $0x20] sm:$0xff] }
  0x2d   :  { %v237_v24 = vld [vmem:[%s509_s2] ss:$0 sm:$0xff]  ;;  %s420_s2 = smov [#allocation7]  }
  0x2e   :  { %316 = vmatpush3.bf16.msra.mxu0 %v315_v7  ;;  %329 = vmatpush3.bf16.msra.mxu1 %v315_v7  ;;  %s224_s11 = sshll.u32 %s420_s2, 4  ;;  %s225_s11 = int_to_ptr.vmem [resolvable:$true] %s224_s11 }
  0x2f   :  { %317 = vmatprep.subr.bf16.mxu0 %v417_v0  ;;  %325 = vmatprep.subr.bf16.mxu1 %v417_v0  ;;  %s385_s12 = scalar_lea.vmem %s225_s11, 1152  ;;  %p390_p3 = scmp.lt.s32.totalorder %s225_s11, %s225_s11 }
  0x30   :  { %p386_p2 = scmp.ne.s32.totalorder %s225_s11, %s385_s12  ;;  %p391_p4 = scmp.lt.s32.totalorder %s385_s12, %s385_s12 }
  0x32   :  { %319 = vmatpush3.bf16.msra.mxu0 %v318_v10  ;;  %330 = vmatpush3.bf16.msra.mxu1 %v318_v10  ;;  %p392_p5 = por %p391_p4, %p390_p3 }
  0x33   :  { %320 = vmatprep.subr.bf16.mxu0 %v417_v0  ;;  %326 = vmatprep.subr.bf16.mxu1 %v417_v0 }
  0x34   :  { %p393_p6 = pnand %p392_p5, %p386_p2 }
  0x36   :  { %322 = vmatpush3.bf16.msra.mxu0 %v321_v13  ;;  %331 = vmatpush3.bf16.msra.mxu1 %v321_v13 }
  0x37   :  { %282 = vmatprep.subr.mxu0 %v419_v1  ;;  %327 = vmatprep.subr.mxu1 %v419_v1 }
  0x3a   :  { %283 = vmatpush3.msk.msra.mxu0 %vm96_vm1, %v60_v14  ;;  %332 = vmatpush3.msk.msra.mxu1 %vm96_vm1, %v60_v14 }
  0x3b   :  { %285 = vmatmul.mubr.msk.f32.vlgmr.msra.gmra.mrb[0].mxu0 %vm68_vm2, %v43_v15  ;;  %300 = vmatmul.mubr.msk.f32.vlgmr.msra.gmra.mrb[0].mxu1 %vm68_vm2, %v48_v16 }
  0x3c   :  { %287 = vmatprep.mubr.msk.f32.mxu0 %vm418_vm0, %v419_v1  ;;  %302 = vmatprep.mubr.msk.f32.mxu1 %vm418_vm0, %v419_v1 }
  0x3f   :  { %288 = vmatmul.mubr.msk.f32.gmra.mrb[2].mxu0 %vm68_vm2, %v44_v17  ;;  %303 = vmatmul.mubr.msk.f32.gmra.mrb[2].mxu1 %vm68_vm2, %v49_v18 }
  0x40   :  { %290 = vmatprep.mubr.msk.f32.mxu0 %vm418_vm0, %v419_v1  ;;  %305 = vmatprep.mubr.msk.f32.mxu1 %vm418_vm0, %v419_v1 }
  0x43   :  { %291 = vmatmul.mubr.msk.f32.gmra.mrb[4].mxu0 %vm68_vm2, %v45_v19  ;;  %306 = vmatmul.mubr.msk.f32.gmra.mrb[4].mxu1 %vm68_vm2, %v50_v20 }
  0x44   :  { %293 = vmatprep.mubr.msk.f32.mxu0 %vm418_vm0, %v419_v1  ;;  %308 = vmatprep.mubr.msk.f32.mxu1 %vm418_vm0, %v419_v1 }
  0x47   :  { %294 = vmatmul.mubr.msk.f32.gmra.mrb[6].mxu0 %vm68_vm2, %v46_v21  ;;  %309 = vmatmul.mubr.msk.f32.gmra.mrb[6].mxu1 %vm68_vm2, %v51_v22 }
  0x48   :  { %296 = vmatprep.mubr.msk.f32.mxu0 %vm418_vm0, %v419_v1 }
  0x4b   :  { %297 = vmatmul.mubr.msk.f32.gmra.mrb[8].mxu0 %vm68_vm2, %v47_v23 }
 0x10e   :  { %v166_v25 = vpop.f32.mrb[0].mxu0  ;;  %v191_v26 = vpop.f32.mrb[0].mxu1 }
 0x10f   :  { %v167_v27 = vadd.f32 %v237_v24, %v166_v25  ;;  %v286_v28 = vpop.f32.mrb[1].mxu0  ;;  %v192_v29 = vadd.f32 %v237_v24, %v191_v26  ;;  %v301_v30 = vpop.f32.mrb[1].mxu1 }
 0x111   :  { %210 = vst [vmem:[#allocation7] sm:$0xff] %v167_v27  ;;  %215 = vst [vmem:[#allocation7 + $0x28] sm:$0xff] %v192_v29 }
 0x112   :  { %v171_v31 = vpop.f32.mrb[2].mxu0  ;;  %v196_v32 = vpop.f32.mrb[2].mxu1 }
 0x113   :  { %v172_v33 = vadd.f32 %v237_v24, %v171_v31  ;;  %v289_v34 = vpop.f32.mrb[3].mxu0  ;;  %v197_v35 = vadd.f32 %v237_v24, %v196_v32  ;;  %v304_v36 = vpop.f32.mrb[3].mxu1 }
 0x115   :  { %211 = vst [vmem:[#allocation7 + $0x8] sm:$0xff] %v172_v33  ;;  %216 = vst [vmem:[#allocation7 + $0x30] sm:$0xff] %v197_v35 }
 0x116   :  { %v176_v37 = vpop.f32.mrb[4].mxu0  ;;  %v201_v38 = vpop.f32.mrb[4].mxu1 }
 0x117   :  { %v177_v39 = vadd.f32 %v237_v24, %v176_v37  ;;  %v292_v40 = vpop.f32.mrb[5].mxu0  ;;  %v202_v41 = vadd.f32 %v237_v24, %v201_v38  ;;  %v307_v42 = vpop.f32.mrb[5].mxu1 }
 0x119   :  { %212 = vst [vmem:[#allocation7 + $0x10] sm:$0xff] %v177_v39  ;;  %217 = vst [vmem:[#allocation7 + $0x38] sm:$0xff] %v202_v41 }
 0x11a   :  { %v181_v43 = vpop.f32.mrb[6].mxu0  ;;  %v206_v44 = vpop.f32.mrb[6].mxu1 }
 0x11b   :  { %v182_v45 = vadd.f32 %v237_v24, %v181_v43  ;;  %v295_v46 = vpop.f32.mrb[7].mxu0  ;;  %v207_v47 = vadd.f32 %v237_v24, %v206_v44  ;;  %v310_v48 = vpop.f32.mrb[7].mxu1 }
 0x11d   :  { %213 = vst [vmem:[#allocation7 + $0x18] sm:$0xff] %v182_v45  ;;  %218 = vst [vmem:[#allocation7 + $0x40] sm:$0xff] %v207_v47 }
 0x11e   :  { %v186_v49 = vpop.f32.mrb[8].mxu0 }
 0x11f   :  { %v187_v50 = vadd.f32 %v237_v24, %v186_v49  ;;  %v298_v51 = vpop.f32.mrb[9].mxu0 }
 0x121   :  { %214 = vst [vmem:[#allocation7 + $0x20] sm:$0xff] %v187_v50 }
 0x122   :  { %396 = shalt.err (!%p393_p6)
}
 0x123   :  { %s397_s15 = scalar_lea.hbm %s510_s3, 1152 }
 0x124   :  { %p398_p7 = scmp.ne.s32.totalorder %s510_s3, %s397_s15  ;;  %p401_p8 = scmp.lt.u32.totalorder %s397_s15, %s510_s3 }
 0x126   :  { %p403_p9 = pnand %p401_p8, %p398_p7 }
 0x128   :  { %406 = shalt.err (!%p403_p9)
}
 0x129   :  { %230 = dma.vmem_to_hbm [thread:$0]  %s225_s11, 1152, %s510_s3, [#allocation4], %s414_s22, %s414_s22, %s415_s23  }
 0x12a   :  { %411 = dma.done.wait [#allocation4], 1152  }
 0x12b   :  { %412 = vsyncadd [#allocation4], 4294966144 }
 0x12c   :  { %234 = vsyncpa [#allocation3], 1 }
 0x12d   :  { %235 = vsyncpa [#allocation6], 1 }
 0x12e   :  { %236 = vsyncpa [#allocation4], 1 }

</bundles_post_ra>
